<compile_context>
chip_gen: v7x
topology: tpu7x:2x2x1
jax: 0.10.0
libtpu: 0.0.40
codegen_flags: <defaults>
</compile_context>

<pallas_src>
import functools
import math

import jax
import jax.numpy as jnp
from jax.experimental import pallas as pl
from jax.experimental.pallas import tpu as pltpu

LANE = 128       # hidden feature dims zero-padded to this (lane-dense matmuls)
SUBLANE = 8      # batch dim padded to a multiple of this
TB_MAX = 512     # batch-tile rows per grid step (amortizes per-step overhead)


def _round_up(x, m):
    return ((x + m - 1) // m) * m


def _fused_mlp_kernel(*refs, num_layers):
    # refs = (x_ref, w0, b0, w1, b1, ..., o_ref)
    # x_ref: [TB, Din] f32, w_i: bf16, b_i: [1, N_i] f32, o_ref: [TB, Dout] f32
    x_ref = refs[0]
    o_ref = refs[-1]
    param_refs = refs[1:-1]

    h = x_ref[...]                                  # f32 activation
    for li in range(num_layers):                    # statically unrolled
        w = param_refs[2 * li][...]                 # bf16 [K, N]
        b = param_refs[2 * li + 1][...]             # f32  [1, N]
        h = jnp.dot(h.astype(w.dtype), w, preferred_element_type=jnp.float32) + b
        if li < num_layers - 1:
            h = jnp.maximum(h, 0.0)                 # ReLU on hidden layers only
    o_ref[...] = h.astype(o_ref.dtype)


def fused_mlp_pallas(x, padded_params, output_size):
    """Run the whole MLP in one Pallas kernel, tiled over the batch.

    x: [B, Din] f32 (un-padded).  padded_params: list of (w bf16 [K,N], b f32 [1,N]).
    Returns [B, output_size] f32.
    """
    B, Din = x.shape
    num_layers = len(padded_params)

    # Batch tiling: pad B up to a multiple of the tile (rows only, no lane pad).
    b8 = _round_up(max(B, SUBLANE), SUBLANE)
    tb = min(TB_MAX, b8)
    B_pad = _round_up(b8, tb)
    if B_pad != B:
        x_in = jnp.zeros((B_pad, Din), x.dtype).at[:B, :].set(x)
    else:
        x_in = x
    num_tiles = B_pad // tb

    flat_params = []
    in_specs = [pl.BlockSpec((tb, Din), lambda i: (i, 0))]
    for w, b in padded_params:
        flat_params += [w, b]
        # Constant index_map -> weights/biases DMA'd once, resident across grid.
        in_specs.append(pl.BlockSpec(w.shape, lambda i: (0, 0)))
        in_specs.append(pl.BlockSpec(b.shape, lambda i: (0, 0)))
    out_spec = pl.BlockSpec((tb, output_size), lambda i: (i, 0))

    flops = 2 * B_pad * sum(int(w.shape[0]) * int(w.shape[1]) for w, _ in padded_params)
    bytes_accessed = (
        x_in.size * x_in.dtype.itemsize
        + sum(w.size * w.dtype.itemsize + b.size * b.dtype.itemsize
              for w, b in padded_params)
        + B_pad * output_size * 4
    )

    kernel = functools.partial(_fused_mlp_kernel, num_layers=num_layers)

    y = pl.pallas_call(
        kernel,
        out_shape=jax.ShapeDtypeStruct((B_pad, output_size), jnp.float32),
        grid=(num_tiles,),
        in_specs=in_specs,
        out_specs=out_spec,
        compiler_params=pltpu.CompilerParams(
            dimension_semantics=("parallel",),
            vmem_limit_bytes=32 * 1024 * 1024,
        ),
        cost_estimate=pl.CostEstimate(
            flops=flops, transcendentals=0, bytes_accessed=bytes_accessed),
    )(x_in, *flat_params)

    return y[:B, :] if B_pad != B else y


class SpikeMLPPallas:
    """JAX/Pallas equivalent of the PyTorch SpikeMLP module."""

    def __init__(self, input_size, output_size, hidden_sizes, spike_ts, key):
        self.spike_ts = spike_ts  # unused in forward (matches PyTorch module)
        self.input_size = input_size
        self.output_size = output_size

        sizes = list(hidden_sizes) + [output_size]
        self.params = []          # un-padded f32 (reference / "true" weights)
        self.padded_params = []   # padded once here; weights bf16, biases f32

        prev = input_size
        prev_pad = input_size     # padded width of the incoming activation
        for idx, size in enumerate(sizes):
            is_last = idx == len(sizes) - 1
            out_pad = size if is_last else _round_up(size, LANE)

            key, wk, bk = jax.random.split(key, 3)
            bound = 1.0 / math.sqrt(prev)
            # PyTorch nn.Linear stores weight as [out, in]; we use [in, out]
            # so the kernel computes y = x @ W + b on the MXU.
            w = jax.random.uniform(
                wk, (prev, size), minval=-bound, maxval=bound, dtype=jnp.float32)
            b = jax.random.uniform(
                bk, (1, size), minval=-bound, maxval=bound, dtype=jnp.float32)
            self.params.append((w, b))

            # Zero padding is exact: padded input rows see zero activations,
            # padded output cols get zero weights + zero bias, ReLU(0)=0.
            w_p = (jnp.zeros((prev_pad, out_pad), jnp.float32)
                   .at[:prev, :size].set(w)).astype(jnp.bfloat16)
            b_p = jnp.zeros((1, out_pad), jnp.float32).at[:, :size].set(b)
            self.padded_params.append((w_p, b_p))

            prev = size
            prev_pad = out_pad

    def __call__(self, x, batch_size=None):
        # batch_size kept for signature parity with the PyTorch module; unused.
        B, Din = x.shape
        assert Din == self.input_size
        return fused_mlp_pallas(x, self.padded_params, self.output_size)


def _reference_forward_f32(params, x):
    # Pure-JAX f32 reference (un-padded weights).
    for w, b in params[:-1]:
        x = jnp.maximum(x @ w + b, 0.0)
    w, b = params[-1]
    return x @ w + b


def _reference_forward_matched(padded_params, x, output_size):
    # Pure-JAX reference replicating the kernel's bf16-operand / f32-accum math.
    h = x
    n = len(padded_params)
    for li, (w, b) in enumerate(padded_params):
        h = jnp.dot(h.astype(w.dtype), w, preferred_element_type=jnp.float32) + b
        if li < n - 1:
            h = jnp.maximum(h, 0.0)
    return h[:, :output_size]


if __name__ == "__main__":
    key = jax.random.PRNGKey(0)
    key, pk = jax.random.split(key)

    input_size = 16
    hidden_sizes = [32, 32]
    output_size = 8
    spike_ts = 5  # TODO(synk): spike_ts/device are stored but unused in forward, as in the reference.

    model = SpikeMLPPallas(input_size, output_size, hidden_sizes, spike_ts, pk)

    ok = True
    for batch in (8, 1000):  # 8: single tile; 1000: multi-tile grid + row padding
        key, xk = jax.random.split(key)
        x = jax.random.normal(xk, (batch, input_size), dtype=jnp.float32)

        out = model(x, batch)
        out = jax.block_until_ready(out)
        assert out.shape == (batch, output_size)

        ref_matched = _reference_forward_matched(model.padded_params, x, output_size)
        ref_f32 = _reference_forward_f32(model.params, x)

        ok &= bool(jnp.allclose(out, ref_matched, atol=1e-4, rtol=1e-4))
        ok &= bool(jnp.allclose(out, ref_f32, atol=5e-2, rtol=5e-2))

    assert ok
    print("KERNEL_OK")
</pallas_src>

<mosaic_0001>
module attributes {stable_mosaic.version = 11 : i64} {
  func.func @_fused_mlp_kernel(%arg0: i32, %arg1: memref<8x16xf32, #tpu.memory_space<vmem>>, %arg2: memref<16x128xbf16, #tpu.memory_space<vmem>>, %arg3: memref<1x128xf32, #tpu.memory_space<vmem>>, %arg4: memref<128x128xbf16, #tpu.memory_space<vmem>>, %arg5: memref<1x128xf32, #tpu.memory_space<vmem>>, %arg6: memref<128x8xbf16, #tpu.memory_space<vmem>>, %arg7: memref<1x8xf32, #tpu.memory_space<vmem>>, %arg8: memref<8x8xf32, #tpu.memory_space<vmem>>) attributes {dimension_semantics = [#tpu.dimension_semantics<parallel>], iteration_bounds = array<i64: 1>, scalar_prefetch = 0 : i64, scratch_operands = 0 : i64, tpu.core_type = #tpu.core_type<tc>, window_params = [{transform_indices = @transform_0, window_bounds = array<i64: 8, 16>}, {pipeline_mode = #tpu.pipeline_mode<synchronous>, transform_indices = @transform_1, window_bounds = array<i64: 16, 128>}, {pipeline_mode = #tpu.pipeline_mode<synchronous>, transform_indices = @transform_2, window_bounds = array<i64: 1, 128>}, {pipeline_mode = #tpu.pipeline_mode<synchronous>, transform_indices = @transform_3, window_bounds = array<i64: 128, 128>}, {pipeline_mode = #tpu.pipeline_mode<synchronous>, transform_indices = @transform_4, window_bounds = array<i64: 1, 128>}, {pipeline_mode = #tpu.pipeline_mode<synchronous>, transform_indices = @transform_5, window_bounds = array<i64: 128, 8>}, {pipeline_mode = #tpu.pipeline_mode<synchronous>, transform_indices = @transform_6, window_bounds = array<i64: 1, 8>}, {transform_indices = @transform_7, window_bounds = array<i64: 8, 8>}]} {
    %c0 = arith.constant 0 : index
    %c0_0 = arith.constant 0 : index
    %0 = vector.load %arg1[%c0, %c0_0] : memref<8x16xf32, #tpu.memory_space<vmem>>, vector<8x16xf32>
    %c0_1 = arith.constant 0 : index
    %c0_2 = arith.constant 0 : index
    %1 = vector.load %arg2[%c0_1, %c0_2] : memref<16x128xbf16, #tpu.memory_space<vmem>>, vector<16x128xbf16>
    %c0_3 = arith.constant 0 : index
    %c0_4 = arith.constant 0 : index
    %2 = vector.load %arg3[%c0_3, %c0_4] : memref<1x128xf32, #tpu.memory_space<vmem>>, vector<1x128xf32>
    %3 = arith.truncf %0 : vector<8x16xf32> to vector<8x16xbf16>
    %cst = arith.constant dense<0.000000e+00> : vector<8x128xf32>
    %4 = tpu.matmul %3, %1, %cst {dimension_numbers = #tpu.dot_dimension_numbers<[1], [0], [0], [1], [0, 0, 1, 1], [], []>} : vector<8x16xbf16>, vector<16x128xbf16>, vector<8x128xf32> -> vector<8x128xf32>
    %5 = vector.broadcast %2 : vector<1x128xf32> to vector<8x128xf32>
    %6 = arith.addf %4, %5 : vector<8x128xf32>
    %cst_5 = arith.constant 0.000000e+00 : f32
    %7 = vector.broadcast %cst_5 : f32 to vector<8x128xf32>
    %8 = arith.maximumf %6, %7 : vector<8x128xf32>
    %c0_6 = arith.constant 0 : index
    %c0_7 = arith.constant 0 : index
    %9 = vector.load %arg4[%c0_6, %c0_7] : memref<128x128xbf16, #tpu.memory_space<vmem>>, vector<128x128xbf16>
    %c0_8 = arith.constant 0 : index
    %c0_9 = arith.constant 0 : index
    %10 = vector.load %arg5[%c0_8, %c0_9] : memref<1x128xf32, #tpu.memory_space<vmem>>, vector<1x128xf32>
    %11 = arith.truncf %8 : vector<8x128xf32> to vector<8x128xbf16>
    %cst_10 = arith.constant dense<0.000000e+00> : vector<8x128xf32>
    %12 = tpu.matmul %11, %9, %cst_10 {dimension_numbers = #tpu.dot_dimension_numbers<[1], [0], [0], [1], [0, 0, 1, 1], [], []>} : vector<8x128xbf16>, vector<128x128xbf16>, vector<8x128xf32> -> vector<8x128xf32>
    %13 = vector.broadcast %10 : vector<1x128xf32> to vector<8x128xf32>
    %14 = arith.addf %12, %13 : vector<8x128xf32>
    %cst_11 = arith.constant 0.000000e+00 : f32
    %15 = vector.broadcast %cst_11 : f32 to vector<8x128xf32>
    %16 = arith.maximumf %14, %15 : vector<8x128xf32>
    %c0_12 = arith.constant 0 : index
    %c0_13 = arith.constant 0 : index
    %17 = vector.load %arg6[%c0_12, %c0_13] : memref<128x8xbf16, #tpu.memory_space<vmem>>, vector<128x8xbf16>
    %c0_14 = arith.constant 0 : index
    %c0_15 = arith.constant 0 : index
    %18 = vector.load %arg7[%c0_14, %c0_15] : memref<1x8xf32, #tpu.memory_space<vmem>>, vector<1x8xf32>
    %19 = arith.truncf %16 : vector<8x128xf32> to vector<8x128xbf16>
    %cst_16 = arith.constant dense<0.000000e+00> : vector<8x8xf32>
    %20 = tpu.matmul %19, %17, %cst_16 {dimension_numbers = #tpu.dot_dimension_numbers<[1], [0], [0], [1], [0, 0, 1, 1], [], []>} : vector<8x128xbf16>, vector<128x8xbf16>, vector<8x8xf32> -> vector<8x8xf32>
    %21 = vector.broadcast %18 : vector<1x8xf32> to vector<8x8xf32>
    %22 = arith.addf %20, %21 : vector<8x8xf32>
    %c0_17 = arith.constant 0 : index
    %c0_18 = arith.constant 0 : index
    %23 = vector.load %arg8[%c0_17, %c0_18] : memref<8x8xf32, #tpu.memory_space<vmem>>, vector<8x8xf32>
    tpu.vector_store %arg8[%c0_17, %c0_18], %22 {strides = array<i32>} : memref<8x8xf32, #tpu.memory_space<vmem>>, vector<8x8xf32>,
    return
  }
  func.func @transform_0(%arg0: i32) -> (i32, i32) {
    %c0_i32 = arith.constant 0 : i32
    %c0_i32_0 = arith.constant 0 : i32
    return %arg0, %c0_i32 : i32, i32
  }
  func.func @transform_1(%arg0: i32) -> (i32, i32) {
    %c0_i32 = arith.constant 0 : i32
    %c0_i32_0 = arith.constant 0 : i32
    %c0_i32_1 = arith.constant 0 : i32
    return %c0_i32, %c0_i32_0 : i32, i32
  }
  func.func @transform_2(%arg0: i32) -> (i32, i32) {
    %c0_i32 = arith.constant 0 : i32
    %c0_i32_0 = arith.constant 0 : i32
    %c0_i32_1 = arith.constant 0 : i32
    return %c0_i32, %c0_i32_0 : i32, i32
  }
  func.func @transform_3(%arg0: i32) -> (i32, i32) {
    %c0_i32 = arith.constant 0 : i32
    %c0_i32_0 = arith.constant 0 : i32
    %c0_i32_1 = arith.constant 0 : i32
    return %c0_i32, %c0_i32_0 : i32, i32
  }
  func.func @transform_4(%arg0: i32) -> (i32, i32) {
    %c0_i32 = arith.constant 0 : i32
    %c0_i32_0 = arith.constant 0 : i32
    %c0_i32_1 = arith.constant 0 : i32
    return %c0_i32, %c0_i32_0 : i32, i32
  }
  func.func @transform_5(%arg0: i32) -> (i32, i32) {
    %c0_i32 = arith.constant 0 : i32
    %c0_i32_0 = arith.constant 0 : i32
    %c0_i32_1 = arith.constant 0 : i32
    return %c0_i32, %c0_i32_0 : i32, i32
  }
  func.func @transform_6(%arg0: i32) -> (i32, i32) {
    %c0_i32 = arith.constant 0 : i32
    %c0_i32_0 = arith.constant 0 : i32
    %c0_i32_1 = arith.constant 0 : i32
    return %c0_i32, %c0_i32_0 : i32, i32
  }
  func.func @transform_7(%arg0: i32) -> (i32, i32) {
    %c0_i32 = arith.constant 0 : i32
    %c0_i32_0 = arith.constant 0 : i32
    return %arg0, %c0_i32 : i32, i32
  }
}

</mosaic_0001>

<bundles_post_ra>
// kernel: tpu_custom_call.1
= control target key start
LH: loop header
LB: loop body
LE: loop exit
PB: predicated region body
PF: predicated region fallthrough
CT: control target
= control target key end

     0   :  { %12 = vsyncpa [#allocation3], 0  ;;  %s654_s0 = inlined_call_operand.vmem [shape: f32[8,16], index: 0, kind: input, shape index: {}]   ;;  %s655_s1 = inlined_call_operand.hbm [shape: bf16[16,128], index: 1, kind: input, shape index: {}]   ;;  %s656_s2 = inlined_call_operand.vmem [shape: f32[1,128], index: 2, kind: input, shape index: {}]   ;;  %s657_s3 = inlined_call_operand.vmem [shape: bf16[128,128], index: 3, kind: input, shape index: {}]   ;;  %s658_s4 = inlined_call_operand.vmem [shape: f32[1,128], index: 4, kind: input, shape index: {}]   ;;  %s659_s5 = inlined_call_operand.vmem [shape: bf16[128,8], index: 5, kind: input, shape index: {}]   ;;  %s660_s6 = inlined_call_operand.vmem [shape: f32[1,8], index: 6, kind: input, shape index: {}]   ;;  %s661_s7 = inlined_call_operand.hbm [shape: f32[8,8], index: 7, kind: output, shape index: {}]  }
   0x1   :  { %13 = vsyncpa [#allocation4], 0  ;;  %s504_s24 = smov [#allocation2]   ;;  %s456_s28 = scalar_lea.hbm %s655_s1, 128 }
   0x2   :  { %s21_s25 = sshll.u32 %s504_s24, 4  ;;  %p457_p0 = scmp.ne.s32.totalorder %s655_s1, %s456_s28  ;;  %s22_s25 = int_to_ptr.vmem [resolvable:$true] %s21_s25 }
   0x3   :  { %p460_p1 = scmp.lt.u32.totalorder %s456_s28, %s655_s1 }
   0x5   :  { %p462_p2 = pnand %p460_p1, %p457_p0 }
   0x7   :  { %465 = shalt.err (!%p462_p2)
}
   0x8   :  { %s466_s10 = scalar_lea.vmem %s22_s25, 128  ;;  %p471_p4 = scmp.lt.s32.totalorder %s22_s25, %s22_s25 }
   0x9   :  { %p467_p3 = scmp.ne.s32.totalorder %s22_s25, %s466_s10  ;;  %p472_p5 = scmp.lt.s32.totalorder %s466_s10, %s466_s10 }
   0xb   :  { %p473_p6 = por %p472_p5, %p471_p4 }
   0xd   :  { %p474_p7 = pnand %p473_p6, %p467_p3 }
   0xf   :  { %477 = shalt.err (!%p474_p7)
}
  0x10   :  { %s505_s11 = smov 64   ;;  %s506_s12 = smov 4  }
  0x11   :  { %27 = dma.hbm_to_vmem [thread:$0]  %s655_s1, 128, %s22_s25, [#allocation3], %s505_s11, %s505_s11, %s506_s12  }
  0x12   :  { %500 = dma.done.wait [#allocation3], 128  }
  0x13   :  { %501 = vsyncadd [#allocation3], 4294967168  ;;  %v507_v0 = vmov 0.0   ;;  %vm508_vm0 = vmmov 0   ;;  %v439_v1 = vld [vmem:[#allocation2] sm:$0xff]   ;;  %vm59_vm1 = vcmask 130048  }
  0x14   :  { %387 = vmatprep.subr.bf16.mxu0 %v507_v0  ;;  %389 = vmatprep.mubr.msk.bf16.mxu0 %vm508_vm0, %v507_v0  ;;  %v42_v2 = vld [vmem:[%s654_s0] sm:$0xff]  ;;  %v441_v5 = vld [vmem:[%s657_s3 + $0x8] sm:$0xff]   ;;  %v442_v6 = vld [vmem:[%s657_s3 + $0x10] sm:$0xff]   ;;  %s509_s26 = smov [#allocation5]   ;;  %vm329_vm2 = vcmask 64512  }
  0x15   :  { %393 = vmatprep.subr.bf16.mxu1 %v507_v0  ;;  %409 = vmatprep.mubr.msk.bf16.mxu1 %vm508_vm0, %v507_v0  ;;  %v46_v3 = vpack.c.bf16 %v42_v2, %v42_v2  ;;  %v440_v4 = vld [vmem:[%s657_s3] sm:$0xff]   ;;  %v443_v7 = vld [vmem:[%s657_s3 + $0x18] sm:$0xff]   ;;  %v445_v9 = vld [vmem:[%s657_s3 + $0x28] sm:$0xff]   ;;  %s337_s27 = sshll.u32 %s509_s26, 4  ;;  %s338_s27 = int_to_ptr.vmem [resolvable:$true] %s337_s27 }
  0x16   :  { %388 = vmatpush3.bf16.msra.mxu0 %v439_v1  ;;  %394 = vmatpush3.bf16.msra.mxu1 %v440_v4  ;;  %v444_v8 = vld [vmem:[%s657_s3 + $0x20] sm:$0xff]   ;;  %v446_v10 = vld [vmem:[%s657_s3 + $0x30] sm:$0xff]   ;;  %v447_v11 = vld [vmem:[%s657_s3 + $0x38] sm:$0xff]   ;;  %p483_p9 = scmp.lt.s32.totalorder %s338_s27, %s338_s27 }
  0x17   :  { %413 = vmatprep.subr.bf16.mxu0 %v507_v0  ;;  %395 = vmatprep.subr.bf16.mxu1 %v507_v0  ;;  %v448_v12 = vld [vmem:[%s659_s5] sm:$0xff]   ;;  %v449_v13 = vld [vmem:[%s659_s5 + $0x8] sm:$0xff]   ;;  %v450_v14 = vld [vmem:[%s659_s5 + $0x10] sm:$0xff]  }
  0x18   :  { %v451_v15 = vld [vmem:[%s659_s5 + $0x18] sm:$0xff]   ;;  %v452_v16 = vld [vmem:[%s659_s5 + $0x20] sm:$0xff]   ;;  %v453_v17 = vld [vmem:[%s659_s5 + $0x28] sm:$0xff]  }
  0x19   :  { %390 = vmatmul.mubr.msk.bf16.vlgmr.msra.gmra.mrb[0].mxu0 %vm59_vm1, %v46_v3  ;;  %v346_v18 = vld [vmem:[%s656_s2] ss:$0 sm:$0xff]  ;;  %v454_v26 = vld [vmem:[%s659_s5 + $0x30] sm:$0xff]   ;;  %v455_v27 = vld [vmem:[%s659_s5 + $0x38] sm:$0xff]  }
  0x1a   :  { %429 = vmatprep.mubr.msk.bf16.mxu0 %vm508_vm0, %v507_v0  ;;  %396 = vmatpush3.bf16.msra.mxu1 %v441_v5  ;;  %v349_v28 = vld [vmem:[%s658_s4] ss:$0 sm:$0xff]  ;;  %s478_s4 = scalar_lea.vmem %s338_s27, 128 }
  0x1b   :  { %397 = vmatprep.subr.bf16.mxu1 %v507_v0  ;;  %414 = vmatpush3.bf16.msra.mxu0 %v448_v12  ;;  %v358_v36 = vld [vmem:[%s660_s6] ss:$0 sm:$0xff]  ;;  %p479_p8 = scmp.ne.s32.totalorder %s338_s27, %s478_s4  ;;  %p484_p10 = scmp.lt.s32.totalorder %s478_s4, %s478_s4 }
  0x1c   :  { %415 = vmatprep.subr.bf16.mxu0 %v507_v0 }
  0x1d   :  { %p485_p11 = por %p484_p10, %p483_p9 }
  0x1e   :  { %398 = vmatpush3.bf16.msra.mxu1 %v442_v6 }
  0x1f   :  { %399 = vmatprep.subr.bf16.mxu1 %v507_v0  ;;  %416 = vmatpush3.bf16.msra.mxu0 %v449_v13  ;;  %p486_p12 = pnand %p485_p11, %p479_p8 }
  0x20   :  { %417 = vmatprep.subr.bf16.mxu0 %v507_v0 }
  0x22   :  { %400 = vmatpush3.bf16.msra.mxu1 %v443_v7 }
  0x23   :  { %401 = vmatprep.subr.bf16.mxu1 %v507_v0  ;;  %418 = vmatpush3.bf16.msra.mxu0 %v450_v14 }
  0x24   :  { %419 = vmatprep.subr.bf16.mxu0 %v507_v0 }
  0x26   :  { %402 = vmatpush3.bf16.msra.mxu1 %v444_v8 }
  0x27   :  { %403 = vmatprep.subr.bf16.mxu1 %v507_v0  ;;  %420 = vmatpush3.bf16.msra.mxu0 %v451_v15 }
  0x28   :  { %421 = vmatprep.subr.bf16.mxu0 %v507_v0 }
  0x2a   :  { %404 = vmatpush3.bf16.msra.mxu1 %v445_v9 }
  0x2b   :  { %405 = vmatprep.subr.bf16.mxu1 %v507_v0  ;;  %422 = vmatpush3.bf16.msra.mxu0 %v452_v16 }
  0x2c   :  { %423 = vmatprep.subr.bf16.mxu0 %v507_v0 }
  0x2e   :  { %406 = vmatpush3.bf16.msra.mxu1 %v446_v10 }
  0x2f   :  { %407 = vmatprep.subr.bf16.mxu1 %v507_v0  ;;  %424 = vmatpush3.bf16.msra.mxu0 %v453_v17 }
  0x30   :  { %425 = vmatprep.subr.bf16.mxu0 %v507_v0 }
  0x32   :  { %408 = vmatpush3.bf16.msra.mxu1 %v447_v11 }
  0x33   :  { %426 = vmatpush3.bf16.msra.mxu0 %v454_v26 }
  0x34   :  { %427 = vmatprep.subr.bf16.mxu0 %v507_v0 }
  0x37   :  { %428 = vmatpush3.bf16.msra.mxu0 %v455_v27 }
  0xec   :  { %v97_v19 = vpop.f32.mrb[0].mxu0 }
  0xed   :  { %v98_v20 = vadd.f32 %v346_v18, %v97_v19  ;;  %v391_v21 = vpop.f32.mrb[1].mxu0 }
  0xee   :  { %v100_v22 = vpop.f32.mrb[2].mxu0 }
  0xef   :  { %v103_v23 = vmax.f32 %v98_v20, 0.0  ;;  %v392_v24 = vpop.f32.mrb[3].mxu0 }
  0xf1   :  { %v121_v25 = vpack.c.bf16 %v103_v23, %v103_v23 }
  0xf3   :  { %410 = vmatmul.mubr.bf16.vlgmr.msra.gmra.mrb[0].mxu1 %v121_v25 }
 0x1c6   :  { %v210_v29 = vpop.f32.mrb[0].mxu1 }
 0x1c7   :  { %v211_v30 = vadd.f32 %v349_v28, %v210_v29  ;;  %v411_v31 = vpop.f32.mrb[1].mxu1 }
 0x1c8   :  { %v213_v32 = vpop.f32.mrb[2].mxu1 }
 0x1c9   :  { %v216_v33 = vmax.f32 %v211_v30, 0.0  ;;  %v412_v34 = vpop.f32.mrb[3].mxu1 }
 0x1cb   :  { %v234_v35 = vpack.c.bf16 %v216_v33, %v216_v33 }
 0x1cd   :  { %430 = vmatmul.mubr.bf16.vlgmr.msra.gmra.mrb[4].mxu0 %v234_v35 }
 0x2a0   :  { %v323_v37 = vpop.f32.mrb[4].mxu0 }
 0x2a1   :  { %v324_v38 = vadd.f32 %v358_v36, %v323_v37  ;;  %v431_v39 = vpop.f32.mrb[5].mxu0 }
 0x2a2   :  { %v326_v40 = vpop.f32.mrb[6].mxu0 }
 0x2a3   :  { %v432_v41 = vpop.f32.mrb[7].mxu0  ;;  %330 = vst.msk [vmem:[#allocation5] sm:$0xff] %vm329_vm2, %v324_v38 }
 0x2a4   :  { %489 = shalt.err (!%p486_p12)
}
 0x2a5   :  { %s490_s6 = scalar_lea.hbm %s661_s7, 128 }
 0x2a6   :  { %p491_p13 = scmp.ne.s32.totalorder %s661_s7, %s490_s6  ;;  %p494_p0 = scmp.lt.u32.totalorder %s490_s6, %s661_s7 }
 0x2a8   :  { %p496_p1 = pnand %p494_p0, %p491_p13 }
 0x2aa   :  { %499 = shalt.err (!%p496_p1)
}
 0x2ab   :  { %340 = dma.vmem_to_hbm [thread:$0]  %s338_s27, 128, %s661_s7, [#allocation4]  }
 0x2ac   :  { %502 = dma.done.wait [#allocation4], 128  }
 0x2ad   :  { %503 = vsyncadd [#allocation4], 4294967168 }
 0x2ae   :  { %344 = vsyncpa [#allocation3], 1 }
 0x2af   :  { %345 = vsyncpa [#allocation4], 1 }

</bundles_post_ra>
